<compile_context>
chip_gen: v7x
topology: tpu7x:2x2x1
jax: 0.10.0
libtpu: 0.0.40
codegen_flags: <defaults>
</compile_context>

<pallas_src>
import jax
import jax.numpy as jnp
from jax import lax
from jax.experimental import pallas as pl
from jax.experimental.pallas import tpu as pltpu


LEAKY_SLOPE = 0.01  # nn.LeakyReLU default negative_slope


def _classifier_kernel(h1_ref, h2_ref, tag_ref,
                       wa1_ref, wa2_ref, wat_ref, ba1_ref, ba2_ref,
                       wb1_ref, wb2_ref, bb1_ref, bb2_ref,
                       out_ref):
    tb = h1_ref.shape[0]
    n_tags = wat_ref.shape[0]

    # ---- branch 1: Lin(IN,H) -> LeakyReLU -> Lin(H,H) ----------------------
    a1 = (jnp.dot(h1_ref[...], wa1_ref[...], preferred_element_type=jnp.float32)
          + ba1_ref[...])
    a1 = jnp.where(a1 >= 0, a1, LEAKY_SLOPE * a1)
    h1o = (jnp.dot(a1.astype(jnp.bfloat16), wb1_ref[...],
                   preferred_element_type=jnp.float32) + bb1_ref[...])

    # ---- branch 2: Lin(IN+H,H)(cat[h2, tag_emb]) -> LeakyReLU -> Lin(H,H) --
    # Tag-embedding contribution selected via a tiny in-kernel one-hot matmul
    # against the precomputed (n_tags, H) table wat = tag_emb @ w2a[IN:].
    onehot = (tag_ref[...] ==
              lax.broadcasted_iota(jnp.int32, (tb, n_tags), 1)
              ).astype(jnp.float32)
    a2 = (jnp.dot(h2_ref[...], wa2_ref[...], preferred_element_type=jnp.float32)
          + jnp.dot(onehot, wat_ref[...], preferred_element_type=jnp.float32)
          + ba2_ref[...])
    a2 = jnp.where(a2 >= 0, a2, LEAKY_SLOPE * a2)
    h2o = (jnp.dot(a2.astype(jnp.bfloat16), wb2_ref[...],
                   preferred_element_type=jnp.float32) + bb2_ref[...])

    # ---- batched inner product (TB, 1) output block ------------------------
    out_ref[...] = jnp.sum(h1o * h2o, axis=-1, keepdims=True)


def _choose_block_b(B, in_dims):
    # Sublane-aligned batch tile: big enough to amortize the ~0.35us per-step
    # overhead, small enough that double-buffered bf16 activation tiles stay
    # within a modest VMEM slice (safe on v7x's 64 MiB as well as v5e/v6e).
    bytes_per_row = 8 * in_dims + 64          # h1+h2 bf16, double-buffered, + tag/out
    cap = max(8, (8 * 1024 * 1024) // bytes_per_row)
    blk = min(1024, cap, ((B + 7) // 8) * 8)
    return max(8, (blk // 8) * 8)


def classifier_forward(h1, h2, tag_idx, params, *, block_b=None):
    """h1, h2: (B, in_dims) float; tag_idx: (B,) int. Returns (B,) float32."""
    assert h1.shape == h2.shape
    B, in_dims = h1.shape
    hidden = params["wb1"].shape[0]
    n_tags = params["wat"].shape[0]

    if block_b is None:
        block_b = _choose_block_b(B, in_dims)
    grid_b = pl.cdiv(B, block_b)
    b_pad = grid_b * block_b

    # bf16 activations at the wrapper boundary (halves HBM traffic).
    h1 = h1.astype(jnp.bfloat16)
    h2 = h2.astype(jnp.bfloat16)
    tag_idx = tag_idx.astype(jnp.int32).reshape(B, 1)
    if b_pad != B:
        pad = ((0, b_pad - B), (0, 0))
        h1 = jnp.pad(h1, pad)
        h2 = jnp.pad(h2, pad)
        tag_idx = jnp.pad(tag_idx, pad)

    weight_args = (params["wa1"], params["wa2"], params["wat"],
                   params["ba1"], params["ba2"],
                   params["wb1"], params["wb2"],
                   params["bb1"], params["bb2"])

    data_specs = [
        pl.BlockSpec((block_b, in_dims), lambda i: (i, 0)),   # h1 tile
        pl.BlockSpec((block_b, in_dims), lambda i: (i, 0)),   # h2 tile
        pl.BlockSpec((block_b, 1), lambda i: (i, 0)),         # tag-index tile
    ]
    # Constant block index -> weights stay resident in VMEM across the grid.
    weight_specs = [pl.BlockSpec(a.shape, lambda i: (0, 0)) for a in weight_args]

    flops = int(b_pad) * (4 * in_dims * hidden      # two first-layer dots
                          + 2 * n_tags * hidden     # one-hot tag dot
                          + 4 * hidden * hidden     # two second-layer dots
                          + 8 * hidden)             # biases, LeakyReLU, final dot
    bytes_accessed = int(
        sum(int(a.size) * a.dtype.itemsize
            for a in (h1, h2, tag_idx) + weight_args)
        + b_pad * 4)

    out = pl.pallas_call(
        _classifier_kernel,
        out_shape=jax.ShapeDtypeStruct((b_pad, 1), jnp.float32),
        grid=(grid_b,),
        in_specs=data_specs + weight_specs,
        out_specs=pl.BlockSpec((block_b, 1), lambda i: (i, 0)),
        compiler_params=pltpu.CompilerParams(
            dimension_semantics=("parallel",),
            vmem_limit_bytes=48 * 1024 * 1024),
        cost_estimate=pl.CostEstimate(flops=flops, transcendentals=0,
                                      bytes_accessed=bytes_accessed),
    )(h1, h2, tag_idx, *weight_args)
    return out[:B, 0]


class HiddenReprTagRelationshipClassifierPallas:
    """JAX/Pallas port with deterministic (PyTorch-like) initialization."""

    def __init__(self, in_dims, hidden_dims, tags, key):
        self.in_dims = in_dims
        self.hidden_dims = hidden_dims
        self.tags = {t: i for i, t in enumerate(tags)}
        self.n_tags = len(tags)
        ks = jax.random.split(key, 5)

        def lin(k, fan_in, fan_out):
            kw, kb = jax.random.split(k)
            bound = 1.0 / jnp.sqrt(fan_in)
            w = jax.random.uniform(kw, (fan_in, fan_out), jnp.float32, -bound, bound)
            b = jax.random.uniform(kb, (fan_out,), jnp.float32, -bound, bound)
            return w, b

        tag_emb = jax.random.normal(ks[0], (self.n_tags, hidden_dims), jnp.float32)
        w1a, b1a = lin(ks[1], in_dims, hidden_dims)
        w1b, b1b = lin(ks[2], hidden_dims, hidden_dims)
        w2a, b2a = lin(ks[3], in_dims + hidden_dims, hidden_dims)
        w2b, b2b = lin(ks[4], hidden_dims, hidden_dims)

        # Effective parameters: bf16-rounded (what the kernel sees) stored back
        # in f32 so the pure-JAX reference uses identical values.
        r = lambda x: x.astype(jnp.bfloat16).astype(jnp.float32)
        self.ref_params = dict(tag_emb=r(tag_emb),
                               w1a=r(w1a), b1a=b1a, w1b=r(w1b), b1b=b1b,
                               w2a=r(w2a), b2a=b2a, w2b=r(w2b), b2b=b2b)

        # ---- pack kernel parameters ----------------------------------------
        p = self.ref_params
        self.params = dict(
            wa1=p["w1a"].astype(jnp.bfloat16),                      # (IN, H)
            wa2=p["w2a"][:in_dims].astype(jnp.bfloat16),            # (IN, H)
            # Tag-embedding contribution folded into branch 2's first layer
            # (selected in-kernel by a one-hot matmul). Kept f32 (tiny).
            wat=(p["tag_emb"] @ p["w2a"][in_dims:]).astype(jnp.float32),
            ba1=p["b1a"][None, :], ba2=p["b2a"][None, :],           # (1, H)
            wb1=p["w1b"].astype(jnp.bfloat16),                      # (H, H)
            wb2=p["w2b"].astype(jnp.bfloat16),                      # (H, H)
            bb1=p["b1b"][None, :], bb2=p["b2b"][None, :])           # (1, H)

    def tag_indices(self, tags):
        return jnp.array([self.tags[t] for t in tags], dtype=jnp.int32)

    def __call__(self, h1, h2, tags):
        # TODO(synk): the string-tag -> index dict lookup is host-side Python
        # (no device equivalent); everything from the index on runs on TPU.
        tag_idx = self.tag_indices(tags)
        return classifier_forward(h1, h2, tag_idx, self.params)


def _reference_forward(model, h1, h2, tags):
    """Pure-JAX, module-structured reference (same bf16-rounded parameters)."""
    p = model.ref_params
    tag_idx = model.tag_indices(tags)
    emb = jnp.take(p["tag_emb"], tag_idx, axis=0)
    h1 = h1.astype(jnp.bfloat16).astype(jnp.float32)
    h2 = h2.astype(jnp.bfloat16).astype(jnp.float32)

    def mlp(x, wa, ba, wb, bb):
        a = x @ wa + ba
        a = jnp.where(a >= 0, a, LEAKY_SLOPE * a)
        return a @ wb + bb

    h1o = mlp(h1, p["w1a"], p["b1a"], p["w1b"], p["b1b"])
    h2o = mlp(jnp.concatenate([h2, emb], axis=1),
              p["w2a"], p["b2a"], p["w2b"], p["b2b"])
    return jnp.sum(h1o * h2o, axis=-1)


if __name__ == "__main__":
    B, in_dims, hidden_dims = 8, 32, 32
    tag_names = ["reply", "quote", "retweet", "mention"]

    key = jax.random.PRNGKey(0)
    k_model, k_h1, k_h2, k_tags = jax.random.split(key, 4)

    model = HiddenReprTagRelationshipClassifierPallas(
        in_dims, hidden_dims, tag_names, k_model)

    h1 = jax.random.normal(k_h1, (B, in_dims), jnp.float32)
    h2 = jax.random.normal(k_h2, (B, in_dims), jnp.float32)
    tag_ids = jax.random.randint(k_tags, (B,), 0, len(tag_names))
    tags = [tag_names[int(i)] for i in tag_ids]

    out = model(h1, h2, tags)
    out = jax.block_until_ready(out)

    ref = _reference_forward(model, h1, h2, tags)
    assert out.shape == (B,)
    # bf16 storage of activations / matmul weights (f32 accumulation) ->
    # ~1e-2-level agreement with the f32 reference.
    assert jnp.allclose(out, ref, atol=5e-2, rtol=5e-2), (out, ref)

    print("KERNEL_OK")
</pallas_src>

<mosaic_0001>
module attributes {stable_mosaic.version = 11 : i64} {
  func.func @_classifier_kernel(%arg0: i32, %arg1: memref<8x32xbf16, #tpu.memory_space<vmem>>, %arg2: memref<8x32xbf16, #tpu.memory_space<vmem>>, %arg3: memref<8x1xi32, #tpu.memory_space<vmem>>, %arg4: memref<32x32xbf16, #tpu.memory_space<vmem>>, %arg5: memref<32x32xbf16, #tpu.memory_space<vmem>>, %arg6: memref<4x32xf32, #tpu.memory_space<vmem>>, %arg7: memref<1x32xf32, #tpu.memory_space<vmem>>, %arg8: memref<1x32xf32, #tpu.memory_space<vmem>>, %arg9: memref<32x32xbf16, #tpu.memory_space<vmem>>, %arg10: memref<32x32xbf16, #tpu.memory_space<vmem>>, %arg11: memref<1x32xf32, #tpu.memory_space<vmem>>, %arg12: memref<1x32xf32, #tpu.memory_space<vmem>>, %arg13: memref<8x1xf32, #tpu.memory_space<vmem>>) attributes {dimension_semantics = [#tpu.dimension_semantics<parallel>], iteration_bounds = array<i64: 1>, scalar_prefetch = 0 : i64, scratch_operands = 0 : i64, tpu.core_type = #tpu.core_type<tc>, window_params = [{transform_indices = @transform_0, window_bounds = array<i64: 8, 32>}, {transform_indices = @transform_1, window_bounds = array<i64: 8, 32>}, {transform_indices = @transform_2, window_bounds = array<i64: 8, 1>}, {pipeline_mode = #tpu.pipeline_mode<synchronous>, transform_indices = @transform_3, window_bounds = array<i64: 32, 32>}, {pipeline_mode = #tpu.pipeline_mode<synchronous>, transform_indices = @transform_4, window_bounds = array<i64: 32, 32>}, {pipeline_mode = #tpu.pipeline_mode<synchronous>, transform_indices = @transform_5, window_bounds = array<i64: 4, 32>}, {pipeline_mode = #tpu.pipeline_mode<synchronous>, transform_indices = @transform_6, window_bounds = array<i64: 1, 32>}, {pipeline_mode = #tpu.pipeline_mode<synchronous>, transform_indices = @transform_7, window_bounds = array<i64: 1, 32>}, {pipeline_mode = #tpu.pipeline_mode<synchronous>, transform_indices = @transform_8, window_bounds = array<i64: 32, 32>}, {pipeline_mode = #tpu.pipeline_mode<synchronous>, transform_indices = @transform_9, window_bounds = array<i64: 32, 32>}, {pipeline_mode = #tpu.pipeline_mode<synchronous>, transform_indices = @transform_10, window_bounds = array<i64: 1, 32>}, {pipeline_mode = #tpu.pipeline_mode<synchronous>, transform_indices = @transform_11, window_bounds = array<i64: 1, 32>}, {transform_indices = @transform_12, window_bounds = array<i64: 8, 1>}]} {
    %c0 = arith.constant 0 : index
    %c0_0 = arith.constant 0 : index
    %0 = vector.load %arg1[%c0, %c0_0] : memref<8x32xbf16, #tpu.memory_space<vmem>>, vector<8x32xbf16>
    %c0_1 = arith.constant 0 : index
    %c0_2 = arith.constant 0 : index
    %1 = vector.load %arg4[%c0_1, %c0_2] : memref<32x32xbf16, #tpu.memory_space<vmem>>, vector<32x32xbf16>
    %cst = arith.constant dense<0.000000e+00> : vector<8x32xf32>
    %2 = tpu.matmul %0, %1, %cst {dimension_numbers = #tpu.dot_dimension_numbers<[1], [0], [0], [1], [0, 0, 1, 1], [], []>} : vector<8x32xbf16>, vector<32x32xbf16>, vector<8x32xf32> -> vector<8x32xf32>
    %c0_3 = arith.constant 0 : index
    %c0_4 = arith.constant 0 : index
    %3 = vector.load %arg7[%c0_3, %c0_4] : memref<1x32xf32, #tpu.memory_space<vmem>>, vector<1x32xf32>
    %4 = vector.broadcast %3 : vector<1x32xf32> to vector<8x32xf32>
    %5 = arith.addf %2, %4 : vector<8x32xf32>
    %cst_5 = arith.constant 0.000000e+00 : f32
    %6 = vector.broadcast %cst_5 : f32 to vector<8x32xf32>
    %7 = arith.cmpf oge, %5, %6 : vector<8x32xf32>
    %cst_6 = arith.constant 0.00999999977 : f32
    %8 = vector.broadcast %cst_6 : f32 to vector<8x32xf32>
    %9 = arith.mulf %8, %5 : vector<8x32xf32>
    %10 = arith.select %7, %5, %9 : vector<8x32xi1>, vector<8x32xf32>
    %11 = arith.truncf %10 : vector<8x32xf32> to vector<8x32xbf16>
    %c0_7 = arith.constant 0 : index
    %c0_8 = arith.constant 0 : index
    %12 = vector.load %arg9[%c0_7, %c0_8] : memref<32x32xbf16, #tpu.memory_space<vmem>>, vector<32x32xbf16>
    %cst_9 = arith.constant dense<0.000000e+00> : vector<8x32xf32>
    %13 = tpu.matmul %11, %12, %cst_9 {dimension_numbers = #tpu.dot_dimension_numbers<[1], [0], [0], [1], [0, 0, 1, 1], [], []>} : vector<8x32xbf16>, vector<32x32xbf16>, vector<8x32xf32> -> vector<8x32xf32>
    %c0_10 = arith.constant 0 : index
    %c0_11 = arith.constant 0 : index
    %14 = vector.load %arg11[%c0_10, %c0_11] : memref<1x32xf32, #tpu.memory_space<vmem>>, vector<1x32xf32>
    %15 = vector.broadcast %14 : vector<1x32xf32> to vector<8x32xf32>
    %16 = arith.addf %13, %15 : vector<8x32xf32>
    %c0_12 = arith.constant 0 : index
    %c0_13 = arith.constant 0 : index
    %17 = vector.load %arg3[%c0_12, %c0_13] : memref<8x1xi32, #tpu.memory_space<vmem>>, vector<8x1xi32>
    %18 = tpu.iota {dimensions = array<i32: 1>} : vector<8x4xi32>
    %19 = vector.broadcast %17 : vector<8x1xi32> to vector<8x4xi32>
    %20 = arith.cmpi eq, %19, %18 : vector<8x4xi32>
    %21 = arith.extui %20 : vector<8x4xi1> to vector<8x4xi32>
    %22 = arith.sitofp %21 : vector<8x4xi32> to vector<8x4xf32>
    %c0_14 = arith.constant 0 : index
    %c0_15 = arith.constant 0 : index
    %23 = vector.load %arg2[%c0_14, %c0_15] : memref<8x32xbf16, #tpu.memory_space<vmem>>, vector<8x32xbf16>
    %c0_16 = arith.constant 0 : index
    %c0_17 = arith.constant 0 : index
    %24 = vector.load %arg5[%c0_16, %c0_17] : memref<32x32xbf16, #tpu.memory_space<vmem>>, vector<32x32xbf16>
    %cst_18 = arith.constant dense<0.000000e+00> : vector<8x32xf32>
    %25 = tpu.matmul %23, %24, %cst_18 {dimension_numbers = #tpu.dot_dimension_numbers<[1], [0], [0], [1], [0, 0, 1, 1], [], []>} : vector<8x32xbf16>, vector<32x32xbf16>, vector<8x32xf32> -> vector<8x32xf32>
    %c0_19 = arith.constant 0 : index
    %c0_20 = arith.constant 0 : index
    %26 = vector.load %arg6[%c0_19, %c0_20] : memref<4x32xf32, #tpu.memory_space<vmem>>, vector<4x32xf32>
    %cst_21 = arith.constant dense<0.000000e+00> : vector<8x32xf32>
    %27 = tpu.matmul %22, %26, %cst_21 {dimension_numbers = #tpu.dot_dimension_numbers<[1], [0], [0], [1], [0, 0, 1, 1], [], []>} : vector<8x4xf32>, vector<4x32xf32>, vector<8x32xf32> -> vector<8x32xf32>
    %28 = arith.addf %25, %27 : vector<8x32xf32>
    %c0_22 = arith.constant 0 : index
    %c0_23 = arith.constant 0 : index
    %29 = vector.load %arg8[%c0_22, %c0_23] : memref<1x32xf32, #tpu.memory_space<vmem>>, vector<1x32xf32>
    %30 = vector.broadcast %29 : vector<1x32xf32> to vector<8x32xf32>
    %31 = arith.addf %28, %30 : vector<8x32xf32>
    %cst_24 = arith.constant 0.000000e+00 : f32
    %32 = vector.broadcast %cst_24 : f32 to vector<8x32xf32>
    %33 = arith.cmpf oge, %31, %32 : vector<8x32xf32>
    %cst_25 = arith.constant 0.00999999977 : f32
    %34 = vector.broadcast %cst_25 : f32 to vector<8x32xf32>
    %35 = arith.mulf %34, %31 : vector<8x32xf32>
    %36 = arith.select %33, %31, %35 : vector<8x32xi1>, vector<8x32xf32>
    %37 = arith.truncf %36 : vector<8x32xf32> to vector<8x32xbf16>
    %c0_26 = arith.constant 0 : index
    %c0_27 = arith.constant 0 : index
    %38 = vector.load %arg10[%c0_26, %c0_27] : memref<32x32xbf16, #tpu.memory_space<vmem>>, vector<32x32xbf16>
    %cst_28 = arith.constant dense<0.000000e+00> : vector<8x32xf32>
    %39 = tpu.matmul %37, %38, %cst_28 {dimension_numbers = #tpu.dot_dimension_numbers<[1], [0], [0], [1], [0, 0, 1, 1], [], []>} : vector<8x32xbf16>, vector<32x32xbf16>, vector<8x32xf32> -> vector<8x32xf32>
    %c0_29 = arith.constant 0 : index
    %c0_30 = arith.constant 0 : index
    %40 = vector.load %arg12[%c0_29, %c0_30] : memref<1x32xf32, #tpu.memory_space<vmem>>, vector<1x32xf32>
    %41 = vector.broadcast %40 : vector<1x32xf32> to vector<8x32xf32>
    %42 = arith.addf %39, %41 : vector<8x32xf32>
    %43 = arith.mulf %16, %42 : vector<8x32xf32>
    %cst_31 = arith.constant dense<0.000000e+00> : vector<8xf32>
    %44 = vector.multi_reduction <add>, %43, %cst_31 [1] : vector<8x32xf32> to vector<8xf32>
    %45 = vector.shape_cast %44 : vector<8xf32> to vector<8x1xf32>
    %c0_32 = arith.constant 0 : index
    %c0_33 = arith.constant 0 : index
    %46 = vector.load %arg13[%c0_32, %c0_33] : memref<8x1xf32, #tpu.memory_space<vmem>>, vector<8x1xf32>
    tpu.vector_store %arg13[%c0_32, %c0_33], %45 {strides = array<i32>} : memref<8x1xf32, #tpu.memory_space<vmem>>, vector<8x1xf32>,
    return
  }
  func.func @transform_0(%arg0: i32) -> (i32, i32) {
    %c0_i32 = arith.constant 0 : i32
    %c0_i32_0 = arith.constant 0 : i32
    return %arg0, %c0_i32 : i32, i32
  }
  func.func @transform_1(%arg0: i32) -> (i32, i32) {
    %c0_i32 = arith.constant 0 : i32
    %c0_i32_0 = arith.constant 0 : i32
    return %arg0, %c0_i32 : i32, i32
  }
  func.func @transform_2(%arg0: i32) -> (i32, i32) {
    %c0_i32 = arith.constant 0 : i32
    %c0_i32_0 = arith.constant 0 : i32
    return %arg0, %c0_i32 : i32, i32
  }
  func.func @transform_3(%arg0: i32) -> (i32, i32) {
    %c0_i32 = arith.constant 0 : i32
    %c0_i32_0 = arith.constant 0 : i32
    %c0_i32_1 = arith.constant 0 : i32
    return %c0_i32, %c0_i32_0 : i32, i32
  }
  func.func @transform_4(%arg0: i32) -> (i32, i32) {
    %c0_i32 = arith.constant 0 : i32
    %c0_i32_0 = arith.constant 0 : i32
    %c0_i32_1 = arith.constant 0 : i32
    return %c0_i32, %c0_i32_0 : i32, i32
  }
  func.func @transform_5(%arg0: i32) -> (i32, i32) {
    %c0_i32 = arith.constant 0 : i32
    %c0_i32_0 = arith.constant 0 : i32
    %c0_i32_1 = arith.constant 0 : i32
    return %c0_i32, %c0_i32_0 : i32, i32
  }
  func.func @transform_6(%arg0: i32) -> (i32, i32) {
    %c0_i32 = arith.constant 0 : i32
    %c0_i32_0 = arith.constant 0 : i32
    %c0_i32_1 = arith.constant 0 : i32
    return %c0_i32, %c0_i32_0 : i32, i32
  }
  func.func @transform_7(%arg0: i32) -> (i32, i32) {
    %c0_i32 = arith.constant 0 : i32
    %c0_i32_0 = arith.constant 0 : i32
    %c0_i32_1 = arith.constant 0 : i32
    return %c0_i32, %c0_i32_0 : i32, i32
  }
  func.func @transform_8(%arg0: i32) -> (i32, i32) {
    %c0_i32 = arith.constant 0 : i32
    %c0_i32_0 = arith.constant 0 : i32
    %c0_i32_1 = arith.constant 0 : i32
    return %c0_i32, %c0_i32_0 : i32, i32
  }
  func.func @transform_9(%arg0: i32) -> (i32, i32) {
    %c0_i32 = arith.constant 0 : i32
    %c0_i32_0 = arith.constant 0 : i32
    %c0_i32_1 = arith.constant 0 : i32
    return %c0_i32, %c0_i32_0 : i32, i32
  }
  func.func @transform_10(%arg0: i32) -> (i32, i32) {
    %c0_i32 = arith.constant 0 : i32
    %c0_i32_0 = arith.constant 0 : i32
    %c0_i32_1 = arith.constant 0 : i32
    return %c0_i32, %c0_i32_0 : i32, i32
  }
  func.func @transform_11(%arg0: i32) -> (i32, i32) {
    %c0_i32 = arith.constant 0 : i32
    %c0_i32_0 = arith.constant 0 : i32
    %c0_i32_1 = arith.constant 0 : i32
    return %c0_i32, %c0_i32_0 : i32, i32
  }
  func.func @transform_12(%arg0: i32) -> (i32, i32) {
    %c0_i32 = arith.constant 0 : i32
    %c0_i32_0 = arith.constant 0 : i32
    return %arg0, %c0_i32 : i32, i32
  }
}

</mosaic_0001>

<bundles_post_ra>
// kernel: tpu_custom_call.1
= control target key start
LH: loop header
LB: loop body
LE: loop exit
PB: predicated region body
PF: predicated region fallthrough
CT: control target
= control target key end

     0   :  { %17 = vsyncpa [#allocation3], 0  ;;  %s868_s0 = inlined_call_operand.hbm [shape: bf16[8,32], index: 0, kind: input, shape index: {}]   ;;  %s869_s1 = inlined_call_operand.hbm [shape: bf16[8,32], index: 1, kind: input, shape index: {}]   ;;  %s870_s2 = inlined_call_operand.vmem [shape: s32[8,1], index: 2, kind: input, shape index: {}]   ;;  %s871_s3 = inlined_call_operand.vmem [shape: bf16[32,32], index: 3, kind: input, shape index: {}]   ;;  %s872_s4 = inlined_call_operand.hbm [shape: bf16[32,32], index: 4, kind: input, shape index: {}]   ;;  %s873_s5 = inlined_call_operand.hbm [shape: f32[4,32], index: 5, kind: input, shape index: {}]   ;;  %s874_s6 = inlined_call_operand.vmem [shape: f32[1,32], index: 6, kind: input, shape index: {}]   ;;  %s875_s7 = inlined_call_operand.vmem [shape: f32[1,32], index: 7, kind: input, shape index: {}]   ;;  %s876_s8 = inlined_call_operand.vmem [shape: bf16[32,32], index: 8, kind: input, shape index: {}]   ;;  %s877_s9 = inlined_call_operand.hbm [shape: bf16[32,32], index: 9, kind: input, shape index: {}]   ;;  %s878_s10 = inlined_call_operand.vmem [shape: f32[1,32], index: 10, kind: input, shape index: {}]   ;;  %s879_s11 = inlined_call_operand.vmem [shape: f32[1,32], index: 11, kind: input, shape index: {}]   ;;  %s880_s12 = inlined_call_operand.vmem [shape: f32[8,1], index: 12, kind: output, shape index: {}]  }
   0x1   :  { %18 = vsyncpa [#allocation5], 0 }
   0x2   :  { %19 = vsyncpa [#allocation8], 0  ;;  %s686_s21 = smov [#allocation4]   ;;  %s687_s23 = smov [#allocation7]  }
   0x3   :  { %s36_s22 = sshll.u32 %s686_s21, 4  ;;  %s62_s24 = sshll.u32 %s687_s23, 4  ;;  %s37_s22 = int_to_ptr.vmem [resolvable:$true] %s36_s22  ;;  %s63_s24 = int_to_ptr.vmem [resolvable:$true] %s62_s24 }
   0x4   :  { %s570_s27 = scalar_lea.hbm %s869_s1, 64 }
   0x5   :  { %p571_p0 = scmp.ne.s32.totalorder %s869_s1, %s570_s27  ;;  %p574_p1 = scmp.lt.u32.totalorder %s570_s27, %s869_s1 }
   0x7   :  { %p576_p2 = pnand %p574_p1, %p571_p0 }
   0x9   :  { %579 = shalt.err (!%p576_p2)
}
   0xa   :  { %s580_s14 = scalar_lea.vmem %s37_s22, 64  ;;  %p585_p4 = scmp.lt.s32.totalorder %s37_s22, %s37_s22 }
   0xb   :  { %p581_p3 = scmp.ne.s32.totalorder %s37_s22, %s580_s14  ;;  %p586_p5 = scmp.lt.s32.totalorder %s580_s14, %s580_s14 }
   0xd   :  { %p587_p6 = por %p586_p5, %p585_p4 }
   0xf   :  { %p588_p7 = pnand %p587_p6, %p581_p3 }
  0x11   :  { %591 = shalt.err (!%p588_p7)
}
  0x12   :  { %39 = dma.hbm_to_vmem [thread:$0]  %s869_s1, 64, %s37_s22, [#allocation5]  }
  0x13   :  { %s592_s19 = scalar_lea.hbm %s873_s5, 64 }
  0x14   :  { %p593_p8 = scmp.ne.s32.totalorder %s873_s5, %s592_s19  ;;  %p596_p9 = scmp.lt.u32.totalorder %s592_s19, %s873_s5 }
  0x16   :  { %p598_p10 = pnand %p596_p9, %p593_p8 }
  0x18   :  { %601 = shalt.err (!%p598_p10)
}
  0x19   :  { %s602_s26 = scalar_lea.vmem %s63_s24, 64  ;;  %p607_p12 = scmp.lt.s32.totalorder %s63_s24, %s63_s24 }
  0x1a   :  { %p603_p11 = scmp.ne.s32.totalorder %s63_s24, %s602_s26  ;;  %p608_p13 = scmp.lt.s32.totalorder %s602_s26, %s602_s26 }
  0x1c   :  { %p609_p0 = por %p608_p13, %p607_p12 }
  0x1e   :  { %p610_p1 = pnand %p609_p0, %p603_p11 }
  0x20   :  { %613 = shalt.err (!%p610_p1)
}
  0x21   :  { %65 = dma.hbm_to_vmem [thread:$0]  %s873_s5, 64, %s63_s24, [#allocation8]  }
  0x22   :  { %s688_s27 = smov [#allocation2]   ;;  %s689_s29 = smov [#allocation6]  }
  0x23   :  { %s26_s28 = sshll.u32 %s688_s27, 4  ;;  %s49_s30 = sshll.u32 %s689_s29, 4  ;;  %s27_s28 = int_to_ptr.vmem [resolvable:$true] %s26_s28  ;;  %s785_s30 = int_to_ptr.vmem [resolvable:$true] %s49_s30 }
  0x24   :  { %s614_s15 = scalar_lea.hbm %s868_s0, 64 }
  0x25   :  { %p615_p2 = scmp.ne.s32.totalorder %s868_s0, %s614_s15  ;;  %p618_p3 = scmp.lt.u32.totalorder %s614_s15, %s868_s0 }
  0x27   :  { %p620_p4 = pnand %p618_p3, %p615_p2 }
  0x29   :  { %623 = shalt.err (!%p620_p4)
}
  0x2a   :  { %s624_s5 = scalar_lea.vmem %s27_s28, 64  ;;  %p629_p6 = scmp.lt.s32.totalorder %s27_s28, %s27_s28 }
  0x2b   :  { %p625_p5 = scmp.ne.s32.totalorder %s27_s28, %s624_s5  ;;  %p630_p7 = scmp.lt.s32.totalorder %s624_s5, %s624_s5 }
  0x2d   :  { %p631_p8 = por %p630_p7, %p629_p6 }
  0x2f   :  { %p632_p9 = pnand %p631_p8, %p625_p5 }
  0x31   :  { %635 = shalt.err (!%p632_p9)
}
  0x32   :  { %29 = dma.hbm_to_vmem [thread:$0]  %s868_s0, 64, %s27_s28, [#allocation3]  }
  0x33   :  { %s636_s25 = scalar_lea.hbm %s872_s4, 256 }
  0x34   :  { %p637_p10 = scmp.ne.s32.totalorder %s872_s4, %s636_s25  ;;  %p640_p11 = scmp.lt.u32.totalorder %s636_s25, %s872_s4 }
  0x36   :  { %p642_p12 = pnand %p640_p11, %p637_p10 }
  0x38   :  { %645 = shalt.err (!%p642_p12)
}
  0x39   :  { %s646_s29 = scalar_lea.vmem %s785_s30, 256  ;;  %p651_p0 = scmp.lt.s32.totalorder %s785_s30, %s785_s30 }
  0x3a   :  { %p647_p13 = scmp.ne.s32.totalorder %s785_s30, %s646_s29  ;;  %p652_p1 = scmp.lt.s32.totalorder %s646_s29, %s646_s29 }
  0x3c   :  { %p653_p2 = por %p652_p1, %p651_p0 }
  0x3e   :  { %p654_p3 = pnand %p653_p2, %p647_p13 }
  0x40   :  { %657 = shalt.err (!%p654_p3)
}
  0x41   :  { %s690_s0 = smov 64   ;;  %s691_s28 = smov 4  }
  0x42   :  { %55 = dma.hbm_to_vmem [thread:$0]  %s872_s4, 256, %s785_s30, [#allocation5], %s690_s0, %s690_s0, %s691_s28  }
  0x43   :  { %s692_s15 = smov [#allocation9]   ;;  %s658_s19 = scalar_lea.hbm %s877_s9, 256 }
  0x44   :  { %s77_s16 = sshll.u32 %s692_s15, 4  ;;  %p659_p4 = scmp.ne.s32.totalorder %s877_s9, %s658_s19  ;;  %s78_s16 = int_to_ptr.vmem [resolvable:$true] %s77_s16 }
  0x45   :  { %p662_p5 = scmp.lt.u32.totalorder %s658_s19, %s877_s9 }
  0x47   :  { %p664_p6 = pnand %p662_p5, %p659_p4 }
  0x49   :  { %667 = shalt.err (!%p664_p6)
}
  0x4a   :  { %s668_s23 = scalar_lea.vmem %s78_s16, 256  ;;  %p673_p8 = scmp.lt.s32.totalorder %s78_s16, %s78_s16 }
  0x4b   :  { %p669_p7 = scmp.ne.s32.totalorder %s78_s16, %s668_s23  ;;  %p674_p9 = scmp.lt.s32.totalorder %s668_s23, %s668_s23 }
  0x4d   :  { %p675_p10 = por %p674_p9, %p673_p8 }
  0x4f   :  { %p676_p11 = pnand %p675_p10, %p669_p7 }
  0x51   :  { %679 = shalt.err (!%p676_p11)
}
  0x52   :  { %83 = dma.hbm_to_vmem [thread:$0]  %s877_s9, 256, %s78_s16, [#allocation8], %s690_s0, %s690_s0, %s691_s28  }
  0x53   :  { %680 = dma.done.wait [#allocation3], 64  }
  0x54   :  { %681 = vsyncadd [#allocation3], 4294967232 }
  0x55   :  { %682 = dma.done.wait [#allocation5], 320  }
  0x56   :  { %683 = vsyncadd [#allocation5], 4294966976 }
  0x57   :  { %684 = dma.done.wait [#allocation8], 320  }
  0x58   :  { %685 = vsyncadd [#allocation8], 4294966976  ;;  %v693_v0 = vmov 0.0   ;;  %vm694_vm0 = vmmov 0   ;;  %v695_v1 = vmov 0   ;;  %v562_v2 = vld [vmem:[%s871_s3] sm:$0xff]   ;;  %v243_v9 = vlaneseq }
  0x59   :  { %514 = vmatprep.subr.bf16.mxu0 %v693_v0  ;;  %518 = vmatprep.mubr.msk.bf16.mxu0 %vm694_vm0, %v693_v0  ;;  %v563_v3 = vld [vmem:[%s871_s3 + $0x8] sm:$0xff]   ;;  %vm128_vm1 = vcmask 261120   ;;  %v242_v4 = vld [vmem:[%s870_s2] sm:$0xff]  ;;  %v256_v8 = vld [vmem:[#allocation7] sm:$0xf]  ;;  %vm261_vm2 = vcmask 1043456  }
  0x5a   :  { %561 = vset.pattern.permute.xlu0 %v695_v1  ;;  %522 = vmatprep.subr.bf16.mxu1 %v693_v0  ;;  %v104_v5 = vld [vmem:[#allocation2] sm:$0xf]  ;;  %v565_v7 = vld [vmem:[%s876_s8 + $0x8] sm:$0xff]   ;;  %v244_v10 = vand.u32 127, %v243_v9  ;;  %vm257_vm3 = vcmask 31744   ;;  %v567_v23 = vld [vmem:[#allocation6 + $0x8] sm:$0xff]  }
  0x5b   :  { %526 = vmatprep.mubr.msk.bf16.mxu1 %vm694_vm0, %v693_v0  ;;  %515 = vmatpush3.bf16.msra.mxu0 %v562_v2  ;;  %v564_v6 = vld [vmem:[%s876_s8] sm:$0xff]   ;;  %v566_v21 = vld [vmem:[#allocation6] sm:$0xff]   ;;  %vm472_vm7 = vcmask 7168  }
  0x5c   :  { %516 = vmatprep.subr.bf16.mxu0 %v693_v0  ;;  %246 = vperm.xlu0 %561, %v242_v4   ;;  %v481_v13 = vld [vmem:[%s874_s6] ss:$0 sm:$0xff]  ;;  %v251_v24 = vld [vmem:[#allocation4] sm:$0xf] }
  0x5d   :  { %523 = vmatpush3.bf16.msra.mxu1 %v564_v6  ;;  %v568_v25 = vld [vmem:[#allocation9] sm:$0xff]   ;;  %v569_v26 = vld [vmem:[#allocation9 + $0x8] sm:$0xff]  }
  0x5e   :  { %524 = vmatprep.subr.bf16.mxu1 %v693_v0  ;;  %v495_v34 = vld [vmem:[%s875_s7] ss:$0 sm:$0xff] }
  0x5f   :  { %517 = vmatpush3.bf16.msra.mxu0 %v563_v3  ;;  %v485_v43 = vld [vmem:[%s878_s10] ss:$0 sm:$0xff] }
  0x60   :  { %530 = vmatprep.subr.mxu0 %v693_v0  ;;  %v496_v44 = vld [vmem:[%s879_s11] ss:$0 sm:$0xff] }
  0x61   :  { %525 = vmatpush3.bf16.msra.mxu1 %v565_v7 }
  0x62   :  { %519 = vmatmul.mubr.msk.bf16.vlgmr.msra.gmra.mrb[0].mxu0 %vm128_vm1, %v104_v5  ;;  %535 = vmatprep.subr.bf16.mxu1 %v693_v0 }
  0x63   :  { %532 = vmatprep.mubr.msk.f32.mxu0 %vm694_vm0, %v693_v0  ;;  %531 = vmatpush3.msk.msra.mxu0 %vm261_vm2, %v256_v8 }
  0x64   :  { %543 = vmatprep.subr.bf16.mxu0 %v693_v0 }
  0xdb   :  { %v247_v11 = vpop.permute.xlu0 %246 }
  0xdc   :  { %vm248_vm4 = vcmp.eq.s32.totalorder %v247_v11, %v244_v10 }
  0xdd   :  { %v489_v12 = vsel %vm248_vm4, 1.0, %v693_v0 }
  0xde   :  { %533 = vmatmul.mubr.msk.f32.vlgmr.msra.gmra.mrb[4].mxu0 %vm257_vm3, %v489_v12 }
  0xdf   :  { %547 = vmatprep.mubr.msk.bf16.mxu0 %vm694_vm0, %v693_v0  ;;  %544 = vmatpush3.bf16.msra.mxu0 %v568_v25 }
  0xe0   :  { %545 = vmatprep.subr.bf16.mxu0 %v693_v0 }
  0xe3   :  { %546 = vmatpush3.bf16.msra.mxu0 %v569_v26 }
 0x135   :  { %v166_v14 = vpop.f32.mrb[0].mxu0 }
 0x136   :  { %v167_v15 = vadd.f32 %v481_v13, %v166_v14  ;;  %v520_v16 = vpop.f32.mrb[1].mxu0 }
 0x137   :  { %v169_v17 = vpop.f32.mrb[2].mxu0 }
 0x138   :  { %vm172_vm5 = vcmp.ge.f32.partialorder %v167_v15, 0.0  ;;  %v173_v18 = vmul.f32 0.01, %v167_v15  ;;  %v521_v19 = vpop.f32.mrb[3].mxu0 }
 0x13a   :  { %v174_v20 = vsel %vm172_vm5, %v167_v15, %v173_v18 }
 0x13b   :  { %v175_v22 = vpack.c.bf16 %v174_v20, %v174_v20 }
 0x13d   :  { %527 = vmatmul.mubr.msk.bf16.vlgmr.msra.gmra.mrb[0].mxu1 %vm128_vm1, %v175_v22 }
 0x13e   :  { %536 = vmatpush3.bf16.msra.mxu1 %v566_v21  ;;  %539 = vmatprep.mubr.msk.bf16.mxu1 %vm694_vm0, %v693_v0 }
 0x13f   :  { %537 = vmatprep.subr.bf16.mxu1 %v693_v0 }
 0x142   :  { %538 = vmatpush3.bf16.msra.mxu1 %v567_v23 }
 0x145   :  { %540 = vmatmul.mubr.msk.bf16.vlgmr.msra.gmra.mrb[4].mxu1 %vm128_vm1, %v251_v24 }
 0x1b1   :  { %v331_v27 = vpop.f32.mrb[4].mxu0 }
 0x1b2   :  { %v534_v28 = vpop.f32.mrb[5].mxu0 }
 0x210   :  { %v236_v29 = vpop.f32.mrb[0].mxu1 }
 0x211   :  { %v528_v30 = vpop.f32.mrb[1].mxu1  ;;  %v237_v46 = vadd.f32 %v485_v43, %v236_v29 }
 0x212   :  { %v239_v31 = vpop.f32.mrb[2].mxu1 }
 0x213   :  { %v529_v32 = vpop.f32.mrb[3].mxu1 }
 0x218   :  { %v384_v33 = vpop.f32.mrb[4].mxu1 }
 0x219   :  { %v385_v35 = vadd.f32 %v384_v33, %v331_v27  ;;  %v541_v36 = vpop.f32.mrb[5].mxu1 }
 0x21a   :  { %v387_v37 = vpop.f32.mrb[6].mxu1 }
 0x21b   :  { %v397_v38 = vadd.f32 %v495_v34, %v385_v35  ;;  %v542_v39 = vpop.f32.mrb[7].mxu1 }
 0x21d   :  { %vm398_vm6 = vcmp.ge.f32.partialorder %v397_v38, 0.0  ;;  %v399_v40 = vmul.f32 0.01, %v397_v38 }
 0x21f   :  { %v400_v41 = vsel %vm398_vm6, %v397_v38, %v399_v40 }
 0x220   :  { %v401_v42 = vpack.c.bf16 %v400_v41, %v400_v41 }
 0x222   :  { %548 = vmatmul.mubr.msk.bf16.vlgmr.msra.gmra.mrb[8].mxu0 %vm128_vm1, %v401_v42 }
 0x2f5   :  { %v462_v45 = vpop.f32.mrb[8].mxu0 }
 0x2f6   :  { %v463_v47 = vadd.f32 %v496_v44, %v462_v45  ;;  %v549_v48 = vpop.f32.mrb[9].mxu0 }
 0x2f7   :  { %v465_v49 = vpop.f32.mrb[10].mxu0 }
 0x2f8   :  { %v550_v50 = vpop.f32.mrb[11].mxu0  ;;  %v468_v51 = vmul.f32 %v463_v47, %v237_v46 }
 0x2fa   :  { %v469_v52 = vsel %vm128_vm1, %v468_v51, 0.0 }
 0x2fb   :  { %470 = vadd.xlane.f32.xlu0 %v469_v52 }
 0x388   :  { %v471_v53 = vpop.xlane.xlu0 %470 }
 0x389   :  { %473 = vst.msk [vmem:[%s880_s12] sm:$0xff] %vm472_vm7, %v471_v53 }
 0x38a   :  { %478 = vsyncpa [#allocation3], 1 }
 0x38b   :  { %479 = vsyncpa [#allocation5], 1 }
 0x38c   :  { %480 = vsyncpa [#allocation8], 1 }

</bundles_post_ra>
